<compile_context>
chip_gen: v5e
topology: v5e:2x2
jax: 0.10.0
libtpu: 0.0.40
codegen_flags: <defaults>
</compile_context>

<pallas_src>
import functools
import math

import jax
import jax.numpy as jnp
from jax.experimental import pallas as pl
from jax.experimental.pallas import tpu as pltpu


def _round_up(x, m):
    return ((x + m - 1) // m) * m


def dense_block_kernel(x_ref, w_ref, o_ref, acc_ref, *, scale,
                       negative_slope, activation):
    """Grid = (M tiles, N tiles, K tiles); K is the last ('arbitrary') axis.

    x_ref : [bm, tk] bf16      (flattened activations)
    w_ref : [tn, tk] bf16      (PyTorch [out, in] layout -- NOT transposed)
    o_ref : [bm, tn] f32       (resident across the K axis)
    acc_ref: [bm, tn] f32 VMEM scratch accumulator
    """
    k = pl.program_id(2)

    @pl.when(k == 0)
    def _():
        acc_ref[...] = jnp.zeros_like(acc_ref)

    # Contract on K directly (dims 1 of both operands): avoids any weight
    # transpose outside the kernel; MXU accumulates in f32.
    acc_ref[...] += jax.lax.dot_general(
        x_ref[...], w_ref[...],
        dimension_numbers=(((1,), (1,)), ((), ())),
        preferred_element_type=jnp.float32)

    @pl.when(k == pl.num_programs(2) - 1)
    def _():
        y = acc_ref[...] * scale
        if activation == "lrelu":
            # LeakyReLU with slope < 1: max(y, slope*y) == where(y>=0, y, slope*y)
            y = jnp.maximum(y, negative_slope * y)
        elif activation == "tanh":
            y = jnp.clip(y, -1.0, 1.0)          # nn.Hardtanh
        # 'linear': identity
        o_ref[...] = y.astype(o_ref.dtype)


def dense_block(x, weight_oi, *, wscale_gain=math.sqrt(2.0),
                negative_slope=0.2, activation="lrelu"):
    """Pallas implementation of DenseBlock.forward.

    x         : [B, ...]  flattened to [B, K]
    weight_oi : [out_channels, in_channels]  (PyTorch nn.Linear layout)
    Returns f32 [B, out_channels].
    """
    B = x.shape[0]
    x_flat = jnp.reshape(x, (B, -1))           # glue: reshape only
    K = x_flat.shape[1]
    N, K_w = weight_oi.shape
    assert K_w == K, "in_channels mismatch"

    scale = float(wscale_gain) / math.sqrt(K)

    # Tile sizes: sublane-/lane-aligned, small enough to double-buffer well
    # under v5e's 16 MiB scoped default and v7x's 64 MiB physical VMEM.
    bm = min(128, _round_up(B, 8))
    tn = min(512, _round_up(N, 128))
    tk = min(512, _round_up(K, 128))
    Bp, Np, Kp = _round_up(B, bm), _round_up(N, tn), _round_up(K, tk)

    # bf16 operands halve weight-streaming HBM bytes; MXU accumulates f32.
    # (In a real model the weight would be stored bf16 once at init; the cast
    #  here is only because the demo weight is created in f32.)
    xb = x_flat.astype(jnp.bfloat16)
    wb = weight_oi.astype(jnp.bfloat16)

    # Zero-pad to tile multiples (zeros along K contribute nothing; padded
    # rows/cols are sliced off below).  Padding B->8 keeps full-sublane vregs,
    # padding N to a 128 multiple keeps output stores lane-dense.
    if (Bp, Kp) != (B, K):
        xb = jnp.pad(xb, ((0, Bp - B), (0, Kp - K)))
    if (Np, Kp) != (N, K):
        wb = jnp.pad(wb, ((0, Np - N), (0, Kp - K)))

    grid = (Bp // bm, Np // tn, Kp // tk)

    kernel = functools.partial(
        dense_block_kernel, scale=scale,
        negative_slope=negative_slope, activation=activation)

    out = pl.pallas_call(
        kernel,
        out_shape=jax.ShapeDtypeStruct((Bp, Np), jnp.float32),
        grid_spec=pltpu.PrefetchScalarGridSpec(
            num_scalar_prefetch=0,
            grid=grid,
            in_specs=[
                pl.BlockSpec((bm, tk), lambda i, j, k: (i, k)),   # x tile
                pl.BlockSpec((tn, tk), lambda i, j, k: (j, k)),   # W tile (N,K)
            ],
            out_specs=pl.BlockSpec((bm, tn), lambda i, j, k: (i, j)),
            scratch_shapes=[pltpu.VMEM((bm, tn), jnp.float32)]),
        compiler_params=pltpu.CompilerParams(
            dimension_semantics=("parallel", "parallel", "arbitrary")),
        cost_estimate=pl.CostEstimate(
            flops=2 * Bp * Np * Kp,
            bytes_accessed=Bp * Kp * 2 + Np * Kp * 2 + Bp * Np * 4,
            transcendentals=0),
    )(xb, wb)

    return out[:B, :N]                          # glue: strip padding


def dense_block_ref(x, weight_oi, *, wscale_gain=math.sqrt(2.0),
                    negative_slope=0.2):
    """Pure-JAX f32 reference matching the PyTorch forward exactly."""
    B = x.shape[0]
    xf = jnp.reshape(x, (B, -1))
    scale = float(wscale_gain) / math.sqrt(xf.shape[1])
    y = scale * (xf @ weight_oi.T)
    return jnp.where(y >= 0, y, negative_slope * y)


def dense_block_ref_bf16(x, weight_oi, *, wscale_gain=math.sqrt(2.0),
                         negative_slope=0.2):
    """Reference with the same bf16-operand / f32-accumulate arithmetic."""
    B = x.shape[0]
    xf = jnp.reshape(x, (B, -1)).astype(jnp.bfloat16)
    wb = weight_oi.astype(jnp.bfloat16)
    scale = float(wscale_gain) / math.sqrt(xf.shape[1])
    y = jax.lax.dot_general(xf, wb, (((1,), (1,)), ((), ())),
                            preferred_element_type=jnp.float32) * scale
    return jnp.maximum(y, negative_slope * y)


if __name__ == "__main__":
    key = jax.random.PRNGKey(0)
    kx, kw = jax.random.split(key)

    # Small shapes consistent with the module: flatten NCHW -> in_channels.
    B, C, H, W = 2, 4, 16, 16          # in_channels = C*H*W = 1024
    out_channels = 256                 # 2 K-tiles, 1 N-tile -> exercises grid

    x = jax.random.normal(kx, (B, C, H, W), dtype=jnp.float32)
    weight = jax.random.normal(
        kw, (out_channels, C * H * W), dtype=jnp.float32) * 0.05

    out = jax.block_until_ready(dense_block(x, weight))

    assert out.shape == (B, out_channels)
    assert out.dtype == jnp.float32

    # Tight check against a reference using identical bf16/f32 arithmetic.
    ref_bf16 = dense_block_ref_bf16(x, weight)
    assert jnp.allclose(out, ref_bf16, atol=1e-3, rtol=1e-3), \
        "mismatch vs bf16-arithmetic reference"

    # Looser check against exact f32 PyTorch semantics (bf16 input rounding).
    ref_f32 = dense_block_ref(x, weight)
    assert jnp.allclose(out, ref_f32, atol=2e-2, rtol=2e-2), \
        "mismatch vs f32 reference"

    print("KERNEL_OK")
</pallas_src>

<mosaic_0001>
module attributes {stable_mosaic.version = 11 : i64} {
  func.func @dense_block_kernel(%arg0: i32, %arg1: i32, %arg2: i32, %arg3: memref<8x512xbf16, #tpu.memory_space<vmem>>, %arg4: memref<256x512xbf16, #tpu.memory_space<vmem>>, %arg5: memref<8x256xf32, #tpu.memory_space<vmem>>, %arg6: memref<8x256xf32, #tpu.memory_space<vmem>>) attributes {dimension_semantics = [#tpu.dimension_semantics<parallel>, #tpu.dimension_semantics<parallel>, #tpu.dimension_semantics<arbitrary>], iteration_bounds = array<i64: 1, 1, 2>, scalar_prefetch = 0 : i64, scratch_operands = 1 : i64, tpu.core_type = #tpu.core_type<tc>, window_params = [{transform_indices = @transform_0, window_bounds = array<i64: 8, 512>}, {transform_indices = @transform_1, window_bounds = array<i64: 256, 512>}, {transform_indices = @transform_2, window_bounds = array<i64: 8, 256>}]} {
    %c0_i32 = arith.constant 0 : i32
    %0 = arith.cmpi eq, %arg2, %c0_i32 : i32
    %1 = arith.extui %0 : i1 to i32
    %c0_i32_0 = arith.constant 0 : i32
    %2 = arith.cmpi ne, %1, %c0_i32_0 : i32
    scf.if %2 {
      %cst_9 = arith.constant 0.000000e+00 : f32
      %12 = vector.broadcast %cst_9 : f32 to vector<8x256xf32>
      %c0_10 = arith.constant 0 : index
      %c0_11 = arith.constant 0 : index
      %13 = vector.load %arg6[%c0_10, %c0_11] : memref<8x256xf32, #tpu.memory_space<vmem>>, vector<8x256xf32>
      tpu.vector_store %arg6[%c0_10, %c0_11], %12 {strides = array<i32>} : memref<8x256xf32, #tpu.memory_space<vmem>>, vector<8x256xf32>,
    } else {
    }
    %c0 = arith.constant 0 : index
    %c0_1 = arith.constant 0 : index
    %3 = vector.load %arg6[%c0, %c0_1] : memref<8x256xf32, #tpu.memory_space<vmem>>, vector<8x256xf32>
    %c0_2 = arith.constant 0 : index
    %c0_3 = arith.constant 0 : index
    %4 = vector.load %arg3[%c0_2, %c0_3] : memref<8x512xbf16, #tpu.memory_space<vmem>>, vector<8x512xbf16>
    %c0_4 = arith.constant 0 : index
    %c0_5 = arith.constant 0 : index
    %5 = vector.load %arg4[%c0_4, %c0_5] : memref<256x512xbf16, #tpu.memory_space<vmem>>, vector<256x512xbf16>
    %cst = arith.constant dense<0.000000e+00> : vector<8x256xf32>
    %6 = tpu.matmul %4, %5, %cst {dimension_numbers = #tpu.dot_dimension_numbers<[1], [1], [0], [0], [0, 0, 1, 0], [], []>} : vector<8x512xbf16>, vector<256x512xbf16>, vector<8x256xf32> -> vector<8x256xf32>
    %7 = arith.addf %3, %6 : vector<8x256xf32>
    %c0_6 = arith.constant 0 : index
    %c0_7 = arith.constant 0 : index
    %8 = vector.load %arg6[%c0_6, %c0_7] : memref<8x256xf32, #tpu.memory_space<vmem>>, vector<8x256xf32>
    tpu.vector_store %arg6[%c0_6, %c0_7], %7 {strides = array<i32>} : memref<8x256xf32, #tpu.memory_space<vmem>>, vector<8x256xf32>,
    %c1_i32 = arith.constant 1 : i32
    %9 = arith.cmpi eq, %arg2, %c1_i32 : i32
    %10 = arith.extui %9 : i1 to i32
    %c0_i32_8 = arith.constant 0 : i32
    %11 = arith.cmpi ne, %10, %c0_i32_8 : i32
    scf.if %11 {
      %c0_9 = arith.constant 0 : index
      %c0_10 = arith.constant 0 : index
      %12 = vector.load %arg6[%c0_9, %c0_10] : memref<8x256xf32, #tpu.memory_space<vmem>>, vector<8x256xf32>
      %cst_11 = arith.constant 0.0441941731 : f32
      %13 = vector.broadcast %cst_11 : f32 to vector<8x256xf32>
      %14 = arith.mulf %12, %13 : vector<8x256xf32>
      %cst_12 = arith.constant 2.000000e-01 : f32
      %15 = vector.broadcast %cst_12 : f32 to vector<8x256xf32>
      %16 = arith.mulf %15, %14 : vector<8x256xf32>
      %17 = arith.maximumf %14, %16 : vector<8x256xf32>
      %c0_13 = arith.constant 0 : index
      %c0_14 = arith.constant 0 : index
      %18 = vector.load %arg5[%c0_13, %c0_14] : memref<8x256xf32, #tpu.memory_space<vmem>>, vector<8x256xf32>
      tpu.vector_store %arg5[%c0_13, %c0_14], %17 {strides = array<i32>} : memref<8x256xf32, #tpu.memory_space<vmem>>, vector<8x256xf32>,
    } else {
    }
    return
  }
  func.func @transform_0(%arg0: i32, %arg1: i32, %arg2: i32) -> (i32, i32) {
    %c0_i32 = arith.constant 0 : i32
    return %arg0, %arg2 : i32, i32
  }
  func.func @transform_1(%arg0: i32, %arg1: i32, %arg2: i32) -> (i32, i32) {
    %c0_i32 = arith.constant 0 : i32
    return %arg1, %arg2 : i32, i32
  }
  func.func @transform_2(%arg0: i32, %arg1: i32, %arg2: i32) -> (i32, i32) {
    %c0_i32 = arith.constant 0 : i32
    return %arg0, %arg1 : i32, i32
  }
}

</mosaic_0001>

<bundles_post_ra>
// kernel: tpu_custom_call.1
= control target key start
LH: loop header
LB: loop body
LE: loop exit
PB: predicated region body
PF: predicated region fallthrough
CT: control target
= control target key end

     0   :  { %7 = vsyncpa [#allocation4], 0  ;;  %s1713_s0 = inlined_call_operand.hbm [shape: bf16[8,1024], index: 0, kind: input, shape index: {}]   ;;  %s1714_s1 = inlined_call_operand.hbm [shape: bf16[256,1024], index: 1, kind: input, shape index: {}]   ;;  %s1715_s2 = inlined_call_operand.hbm [shape: f32[8,256], index: 2, kind: output, shape index: {}]  }
   0x1   :  { %9 = vsyncpa [#allocation4 + $0x1], 0 }
   0x2   :  { %10 = vsyncpa [#allocation7], 0 }
   0x3   :  { %12 = vsyncpa [#allocation7 + $0x1], 0 }
   0x4   :  { %13 = vsyncpa [#allocation5], 0  ;;  %s1450_s9 = smov 0   ;;  %s1452_s10 = smov 0  }
   0x5   :  { %s1454_s11 = smov 0   ;;  %s1456_s12 = smov 0  }
   0x6   :  { %s1458_s13 = smov 0   ;;  %s1460_s14 = smov 0  }
   0x7 LB: > { %s871_s15 = sadd.s32 4294967295, %s1428_s14   ;;  %s31_s16 = sadd.s32 1, %s1424_s13  ;;  %s1428_s14 = sphi %s1460_s14, %s19_s14   ;;  %s1424_s13 = sphi %s1458_s13, %s1723_s13   ;;  %s1420_s12 = sphi %s1456_s12, %s1722_s12   ;;  %s1416_s11 = sphi %s1454_s11, %s1721_s11   ;;  %s1412_s10 = sphi %s1452_s10, %s1720_s10   ;;  %s1408_s9 = sphi %s1450_s9, %s1719_s9  }
   0x8   : > { %p32_p0 = scmp.ge.s32.totalorder %s31_s16, 2  ;;  %s47_s17 = sadd.s32 1, %s1416_s11 }
   0x9   : > { %p54_p1 = scmp.ne.s32.totalorder %s1416_s11, %s1412_s10  ;;  %p55_p2 = scmp.eq.s32.totalorder %s1428_s14, 0 }
   0xa   : > { %s1725_s16 = smov (%p32_p0, %s31_s16), 0  ;;  %p60_p4 = scmp.ne.s32.totalorder %s1412_s10, %s1408_s9 }
   0xb   : > { %p1486_p3 = por %p55_p2, %p54_p1  ;;  %s43_s19 = ssub.s32 %s1424_s13, %s1725_s16 }
   0xc   : > { %p61_p5 = scmp.eq.s32.totalorder %s871_s15, 0  ;;  %p45_p6 = scmp.eq.s32.totalorder %s43_s19, 0 }
   0xd   : > { %p1226_p8 = scmp.lt.s32.totalorder %s1428_s14, 2  ;;  %s1504_s22 = sand.u32 1, %s1416_s11  }
   0xe   : > { %p1495_p7 = por %p61_p5, %p60_p4  ;;  %s1145_s23 = sshll.u32 %s1424_s13, 4 }
   0xf   : > { %s1501_s21 = scalar_select %p45_p6, %s1416_s11, %s47_s17  }
  0x10   : > { %s874_s24 = sshll.u32 %s1504_s22, 4  ;;  %s151_s27 = scalar_lea.hbm %s1713_s0, %s1145_s23 }
  0x11   : > { %s153_s28 = sshll.u32 %s151_s27, 4  ;;  %s144_s29 = scalar_lea.vmem [#allocation3], %s874_s24  ;;  %s154_s28 = int_to_ptr.hbm [resolvable:$true] %s153_s28 }
  0x12   : > { %s155_s30 = sshll.u32 %s144_s29, 4  ;;  %p1513_p9 = pnand %p1226_p8, %p1486_p3  ;;  %s156_s30 = int_to_ptr.vmem [resolvable:$true] %s155_s30 }
  0x13   : > { %s877_s4 = sshll.u32 %s1504_s22, 9  ;;  %s174_s7 = scalar_lea.hbm %s1714_s1, %s1145_s23 }
  0x14   : > { %s141_s8 = scalar_lea.sflag [#allocation4], %s1504_s22  ;;  %s175_s9 = sshll.u32 %s174_s7, 4  ;;  %s176_s9 = int_to_ptr.hbm [resolvable:$true] %s175_s9 }
  0x15   : > { %1222 = dma.hbm_to_vmem [thread:$0]  (!%p1513_p9), %s154_s28, 256, %s156_s30, %s141_s8  }
  0x16   : > { %p880_p10 = scmp.ge.s32.totalorder %s1428_s14, 1  ;;  %p185_p11 = scmp.lt.s32.totalorder %s1428_s14, 3 }
  0x17   : > { %s166_s17 = scalar_lea.vmem [#allocation6], %s877_s4  ;;  %s163_s19 = scalar_lea.sflag [#allocation7], %s1504_s22 }
  0x18   : > { %s177_s18 = sshll.u32 %s166_s17, 4  ;;  %p186_p12 = pnand %p880_p10, %p185_p11  ;;  %s178_s18 = int_to_ptr.vmem [resolvable:$true] %s177_s18 }
  0x19   : > { %s1430_s24 = smov 512   ;;  %s1431_s25 = smov 256  }
  0x1a   : > { %s1432_s26 = smov 16   ;;  %189 = sbr.rel (%p186_p12) target bundleno = 335 (0x14f), region = 28 }
  0x1b   : > { %1225 = dma.hbm_to_vmem [thread:$0]  (!%p1513_p9), %s176_s9, 8192, %s178_s18, %s163_s19, %s1430_s24, %s1431_s25, %s1432_s26  }
  0x1c   : > { %s191_s23 = sand.u32 (!%p186_p12), 1, %s1412_s10  }
  0x1d   : > { %s881_s27 = sshll.u32 (!%p186_p12), %s191_s23, 4  ;;  %s192_s28 = scalar_lea.sflag (!%p186_p12), [#allocation4], %s191_s23 }
  0x1e   : > { %s1530_s29 = scalar_lea.vmem (!%p186_p12), [#allocation3], %s881_s27 }
  0x1f   : > { %1395 = dma.done.wait (%p1495_p7), %s192_s28, 256  }
  0x20   : > { %1397 = vsyncadd (%p1495_p7), %s192_s28, 4294967040  ;;  %s882_s22 = sshll.u32 %s191_s23, 9  ;;  %s202_s30 = scalar_lea.sflag [#allocation7], %s191_s23 }
  0x21   : > { %s1536_s4 = scalar_lea.vmem [#allocation6], %s882_s22 }
  0x22   : > { %1399 = dma.done.wait (%p1495_p7), %s202_s30, 8192  }
  0x23   : > { %1401 = vsyncadd (%p1495_p7), %s202_s30, 4294959104  ;;  %p883_p13 = scmp.ne.s32.totalorder %s1420_s12, 0 }
  0x25   : > { %234 = sbr.rel (%p883_p13) target bundleno = 45 (0x2d), region = 40 }
  0x2a   : > { %v1433_v0 = vmov 0.0  }
  0x2b   : > { %235 = vst [vmem:[#allocation2] sm:$0xff] %v1433_v0 }
  0x2c   : > { %236 = vst [vmem:[#allocation2 + $0x8] sm:$0xff] %v1433_v0 }
  0x2d PF: > { %v998_v1 = vld [vmem:[%s1536_s4 + $0xe0] sm:$0xf]  ;;  %v1177_v2 = vld [vmem:[%s1536_s4 + $0xec] sm:$0xf0]  ;;  %v1175_v3 = vld [vmem:[%s1536_s4 + $0xe4] sm:$0xf] }
  0x2e   : > { %v999_v4 = vor.u32 %v1177_v2, %v998_v1  ;;  %v1000_v5 = vld [vmem:[%s1536_s4 + $0xf0] sm:$0xf0]  ;;  %v1006_v6 = vld [vmem:[%s1536_s4 + $0xe8] sm:$0xf]  ;;  %v1178_v7 = vld [vmem:[%s1536_s4 + $0xf4] sm:$0xf0] }
  0x2f   : > { %v1003_v8 = vor.u32 %v1175_v3, %v1000_v5  ;;  %v1007_v9 = vor.u32 %v1178_v7, %v1006_v6  ;;  %v1176_v10 = vld [vmem:[%s1536_s4 + $0xec] sm:$0xf]  ;;  %v1008_v11 = vld [vmem:[%s1536_s4 + $0xf8] sm:$0xf0]  ;;  %v982_v13 = vld [vmem:[%s1536_s4 + $0xc0] sm:$0xf] }
  0x30   : > { %639 = vmatpush.bf16.xpose.msra.mxu0 %v999_v4  ;;  %v1011_v12 = vor.u32 %v1176_v10, %v1008_v11  ;;  %v1173_v14 = vld [vmem:[%s1536_s4 + $0xcc] sm:$0xf0]  ;;  %v1171_v15 = vld [vmem:[%s1536_s4 + $0xc4] sm:$0xf]  ;;  %v984_v16 = vld [vmem:[%s1536_s4 + $0xd0] sm:$0xf0] }
  0x31   : > { %652 = vmatpush.bf16.xpose.msra.mxu1 %v1003_v8  ;;  %665 = vmatpush.bf16.xpose.msra.mxu2 %v1007_v9  ;;  %v990_v17 = vld [vmem:[%s1536_s4 + $0xc8] sm:$0xf]  ;;  %v1174_v18 = vld [vmem:[%s1536_s4 + $0xd4] sm:$0xf0]  ;;  %v1172_v19 = vld [vmem:[%s1536_s4 + $0xcc] sm:$0xf]  ;;  %v983_v21 = vor.u32 %v1173_v14, %v982_v13  ;;  %v987_v22 = vor.u32 %v1171_v15, %v984_v16 }
  0x32   : > { %678 = vmatpush.bf16.xpose.msra.mxu3 %v1011_v12  ;;  %v992_v20 = vld [vmem:[%s1536_s4 + $0xd8] sm:$0xf0]  ;;  %v991_v23 = vor.u32 %v1174_v18, %v990_v17  ;;  %v966_v25 = vld [vmem:[%s1536_s4 + $0xa0] sm:$0xf]  ;;  %v1169_v26 = vld [vmem:[%s1536_s4 + $0xac] sm:$0xf0] }
  0x33   : > { %v995_v24 = vor.u32 %v1172_v19, %v992_v20  ;;  %v1167_v27 = vld [vmem:[%s1536_s4 + $0xa4] sm:$0xf]  ;;  %v968_v28 = vld [vmem:[%s1536_s4 + $0xb0] sm:$0xf0]  ;;  %v974_v29 = vld [vmem:[%s1536_s4 + $0xa8] sm:$0xf]  ;;  %v967_v33 = vor.u32 %v1169_v26, %v966_v25 }
  0x34   : > { %v1170_v30 = vld [vmem:[%s1536_s4 + $0xb4] sm:$0xf0]  ;;  %v1168_v31 = vld [vmem:[%s1536_s4 + $0xac] sm:$0xf]  ;;  %v976_v32 = vld [vmem:[%s1536_s4 + $0xb8] sm:$0xf0]  ;;  %v971_v34 = vor.u32 %v1167_v27, %v968_v28 }
  0x35   : > { %v975_v35 = vor.u32 %v1170_v30, %v974_v29  ;;  %v979_v36 = vor.u32 %v1168_v31, %v976_v32  ;;  %v950_v37 = vld [vmem:[%s1536_s4 + $0x80] sm:$0xf]  ;;  %v1165_v38 = vld [vmem:[%s1536_s4 + $0x8c] sm:$0xf0]  ;;  %v1163_v39 = vld [vmem:[%s1536_s4 + $0x84] sm:$0xf] }
  0x36   : > { %v952_v40 = vld [vmem:[%s1536_s4 + $0x90] sm:$0xf0]  ;;  %v958_v41 = vld [vmem:[%s1536_s4 + $0x88] sm:$0xf]  ;;  %v1166_v42 = vld [vmem:[%s1536_s4 + $0x94] sm:$0xf0]  ;;  %v951_v45 = vor.u32 %v1165_v38, %v950_v37 }
  0x37   : > { %v1164_v43 = vld [vmem:[%s1536_s4 + $0x8c] sm:$0xf]  ;;  %v960_v44 = vld [vmem:[%s1536_s4 + $0x98] sm:$0xf0]  ;;  %v955_v46 = vor.u32 %v1163_v39, %v952_v40  ;;  %v959_v47 = vor.u32 %v1166_v42, %v958_v41  ;;  %v934_v49 = vld [vmem:[%s1536_s4 + $0x60] sm:$0xf] }
  0x38   : > { %640 = vmatpush.bf16.xpose.msra.mxu0 %v983_v21  ;;  %v963_v48 = vor.u32 %v1164_v43, %v960_v44  ;;  %v1161_v50 = vld [vmem:[%s1536_s4 + $0x6c] sm:$0xf0]  ;;  %v1159_v51 = vld [vmem:[%s1536_s4 + $0x64] sm:$0xf]  ;;  %v936_v52 = vld [vmem:[%s1536_s4 + $0x70] sm:$0xf0] }
  0x39   : > { %653 = vmatpush.bf16.xpose.msra.mxu1 %v987_v22  ;;  %666 = vmatpush.bf16.xpose.msra.mxu2 %v991_v23  ;;  %v942_v53 = vld [vmem:[%s1536_s4 + $0x68] sm:$0xf]  ;;  %v1162_v54 = vld [vmem:[%s1536_s4 + $0x74] sm:$0xf0]  ;;  %v1160_v55 = vld [vmem:[%s1536_s4 + $0x6c] sm:$0xf]  ;;  %v935_v57 = vor.u32 %v1161_v50, %v934_v49  ;;  %v939_v58 = vor.u32 %v1159_v51, %v936_v52 }
  0x3a   : > { %679 = vmatpush.bf16.xpose.msra.mxu3 %v995_v24  ;;  %v944_v56 = vld [vmem:[%s1536_s4 + $0x78] sm:$0xf0]  ;;  %v943_v59 = vor.u32 %v1162_v54, %v942_v53  ;;  %v918_v61 = vld [vmem:[%s1536_s4 + $0x40] sm:$0xf]  ;;  %v1157_v62 = vld [vmem:[%s1536_s4 + $0x4c] sm:$0xf0] }
  0x3b   : > { %v947_v60 = vor.u32 %v1160_v55, %v944_v56  ;;  %v1155_v63 = vld [vmem:[%s1536_s4 + $0x44] sm:$0xf]  ;;  %v920_v0 = vld [vmem:[%s1536_s4 + $0x50] sm:$0xf0]  ;;  %v926_v1 = vld [vmem:[%s1536_s4 + $0x48] sm:$0xf]  ;;  %v919_v5 = vor.u32 %v1157_v62, %v918_v61 }
  0x3c   : > { %v1158_v2 = vld [vmem:[%s1536_s4 + $0x54] sm:$0xf0]  ;;  %v1156_v3 = vld [vmem:[%s1536_s4 + $0x4c] sm:$0xf]  ;;  %v928_v4 = vld [vmem:[%s1536_s4 + $0x58] sm:$0xf0]  ;;  %v923_v6 = vor.u32 %v1155_v63, %v920_v0 }
  0x3d   : > { %v927_v7 = vor.u32 %v1158_v2, %v926_v1  ;;  %v931_v8 = vor.u32 %v1156_v3, %v928_v4  ;;  %v902_v9 = vld [vmem:[%s1536_s4 + $0x20] sm:$0xf]  ;;  %v1153_v10 = vld [vmem:[%s1536_s4 + $0x2c] sm:$0xf0]  ;;  %v1151_v11 = vld [vmem:[%s1536_s4 + $0x24] sm:$0xf] }
  0x3e   : > { %v904_v12 = vld [vmem:[%s1536_s4 + $0x30] sm:$0xf0]  ;;  %v910_v13 = vld [vmem:[%s1536_s4 + $0x28] sm:$0xf]  ;;  %v1154_v14 = vld [vmem:[%s1536_s4 + $0x34] sm:$0xf0]  ;;  %v903_v17 = vor.u32 %v1153_v10, %v902_v9 }
  0x3f   : > { %v1152_v15 = vld [vmem:[%s1536_s4 + $0x2c] sm:$0xf]  ;;  %v912_v16 = vld [vmem:[%s1536_s4 + $0x38] sm:$0xf0]  ;;  %v907_v18 = vor.u32 %v1151_v11, %v904_v12  ;;  %v911_v19 = vor.u32 %v1154_v14, %v910_v13  ;;  %v886_v21 = vld [vmem:[%s1536_s4] sm:$0xf] }
  0x40   : > { %641 = vmatpush.bf16.xpose.msra.mxu0 %v967_v33  ;;  %v915_v20 = vor.u32 %v1152_v15, %v912_v16  ;;  %v1149_v22 = vld [vmem:[%s1536_s4 + $0xc] sm:$0xf0]  ;;  %v1147_v23 = vld [vmem:[%s1536_s4 + $0x4] sm:$0xf]  ;;  %v888_v24 = vld [vmem:[%s1536_s4 + $0x10] sm:$0xf0] }
  0x41   : > { %654 = vmatpush.bf16.xpose.msra.mxu1 %v971_v34  ;;  %667 = vmatpush.bf16.xpose.msra.mxu2 %v975_v35  ;;  %v894_v25 = vld [vmem:[%s1536_s4 + $0x8] sm:$0xf]  ;;  %v1150_v26 = vld [vmem:[%s1536_s4 + $0x14] sm:$0xf0]  ;;  %v1148_v27 = vld [vmem:[%s1536_s4 + $0xc] sm:$0xf]  ;;  %v887_v32 = vor.u32 %v1149_v22, %v886_v21 }
  0x42   : > { %680 = vmatpush.bf16.xpose.msra.mxu3 %v979_v36  ;;  %v896_v28 = vld [vmem:[%s1536_s4 + $0x18] sm:$0xf0]  ;;  %v1126_v29 = vld [vmem:[%s1536_s4 + $0x1e0] sm:$0xf]  ;;  %v1209_v30 = vld [vmem:[%s1536_s4 + $0x1ec] sm:$0xf0]  ;;  %v891_v36 = vor.u32 %v1147_v23, %v888_v24  ;;  %v895_v37 = vor.u32 %v1150_v26, %v894_v25 }
  0x43   : > { %v1207_v31 = vld [vmem:[%s1536_s4 + $0x1e4] sm:$0xf]  ;;  %v1128_v33 = vld [vmem:[%s1536_s4 + $0x1f0] sm:$0xf0]  ;;  %v1134_v34 = vld [vmem:[%s1536_s4 + $0x1e8] sm:$0xf]  ;;  %v899_v40 = vor.u32 %v1148_v27, %v896_v28  ;;  %v1127_v41 = vor.u32 %v1209_v30, %v1126_v29 }
  0x44   : > { %v1210_v35 = vld [vmem:[%s1536_s4 + $0x1f4] sm:$0xf0]  ;;  %v1208_v38 = vld [vmem:[%s1536_s4 + $0x1ec] sm:$0xf]  ;;  %v1136_v39 = vld [vmem:[%s1536_s4 + $0x1f8] sm:$0xf0]  ;;  %v1131_v42 = vor.u32 %v1207_v31, %v1128_v33 }
  0x45   : > { %v1135_v43 = vor.u32 %v1210_v35, %v1134_v34  ;;  %v1139_v44 = vor.u32 %v1208_v38, %v1136_v39  ;;  %v1118_v49 = vld [vmem:[%s1536_s4 + $0x1c8] sm:$0xf]  ;;  %v1206_v50 = vld [vmem:[%s1536_s4 + $0x1d4] sm:$0xf0]  ;;  %v1204_v52 = vld [vmem:[%s1536_s4 + $0x1cc] sm:$0xf] }
  0x46   : > { %v240_v51 = vld [vmem:[%s1530_s29 + $0x8] sm:$0xff]  ;;  %v1094_v62 = vld [vmem:[%s1536_s4 + $0x1a0] sm:$0xf]  ;;  %v1201_v63 = vld [vmem:[%s1536_s4 + $0x1ac] sm:$0xf0]  ;;  %p1140_p0 = scmp.ne.s32.totalorder %s1420_s12, 1 }
  0x47   : > { %v1120_v53 = vld [vmem:[%s1536_s4 + $0x1d8] sm:$0xf0]  ;;  %v309_v54 = vunpack.c.l.b16 %v240_v51  ;;  %v310_v55 = vunpack.c.h.b16 %v240_v51  ;;  %v1199_v0 = vld [vmem:[%s1536_s4 + $0x1a4] sm:$0xf]  ;;  %v1096_v2 = vld [vmem:[%s1536_s4 + $0x1b0] sm:$0xf0]  ;;  %v1095_v9 = vor.u32 %v1201_v63, %v1094_v62 }
  0x48   : > { %642 = vmatpush.bf16.xpose.msra.mxu0 %v951_v45  ;;  %v1110_v45 = vld [vmem:[%s1536_s4 + $0x1c0] sm:$0xf]  ;;  %v1123_v61 = vor.u32 %v1204_v52, %v1120_v53  ;;  %v1102_v3 = vld [vmem:[%s1536_s4 + $0x1a8] sm:$0xf]  ;;  %v1202_v4 = vld [vmem:[%s1536_s4 + $0x1b4] sm:$0xf0]  ;;  %v1099_v12 = vor.u32 %v1199_v0, %v1096_v2 }
  0x49   : > { %655 = vmatpush.bf16.xpose.msra.mxu1 %v955_v46  ;;  %668 = vmatpush.bf16.xpose.msra.mxu2 %v959_v47  ;;  %v1205_v46 = vld [vmem:[%s1536_s4 + $0x1cc] sm:$0xf0]  ;;  %v1203_v47 = vld [vmem:[%s1536_s4 + $0x1c4] sm:$0xf]  ;;  %v1103_v13 = vor.u32 %v1202_v4, %v1102_v3  ;;  %v1078_v15 = vld [vmem:[%s1536_s4 + $0x180] sm:$0xf] }
  0x4a   : > { %681 = vmatpush.bf16.xpose.msra.mxu3 %v963_v48  ;;  %v1112_v48 = vld [vmem:[%s1536_s4 + $0x1d0] sm:$0xf0]  ;;  %v1111_v56 = vor.u32 %v1205_v46, %v1110_v45  ;;  %v1197_v16 = vld [vmem:[%s1536_s4 + $0x18c] sm:$0xf0]  ;;  %v1196_v21 = vld [vmem:[%s1536_s4 + $0x18c] sm:$0xf] }
  0x4b   : > { %v239_v1 = vld [vmem:[%s1530_s29] sm:$0xff]  ;;  %v1088_v22 = vld [vmem:[%s1536_s4 + $0x198] sm:$0xf0]  ;;  %v1079_v23 = vor.u32 %v1197_v16, %v1078_v15  ;;  %v1070_v31 = vld [vmem:[%s1536_s4 + $0x168] sm:$0xf] }
  0x4c   : > { %v1091_v26 = vor.u32 %v1196_v21, %v1088_v22  ;;  %v1062_v27 = vld [vmem:[%s1536_s4 + $0x160] sm:$0xf]  ;;  %v1193_v28 = vld [vmem:[%s1536_s4 + $0x16c] sm:$0xf0]  ;;  %v1191_v29 = vld [vmem:[%s1536_s4 + $0x164] sm:$0xf] }
  0x4d   : > { %v1064_v30 = vld [vmem:[%s1536_s4 + $0x170] sm:$0xf0]  ;;  %v1192_v33 = vld [vmem:[%s1536_s4 + $0x16c] sm:$0xf]  ;;  %v1072_v34 = vld [vmem:[%s1536_s4 + $0x178] sm:$0xf0]  ;;  %v1063_v35 = vor.u32 %v1193_v28, %v1062_v27 }
  0x4e   : > { %v1075_v38 = vor.u32 %v1192_v33, %v1072_v34  ;;  %v1046_v39 = vld [vmem:[%s1536_s4 + $0x140] sm:$0xf]  ;;  %v1188_v45 = vld [vmem:[%s1536_s4 + $0x14c] sm:$0xf]  ;;  %v1056_v46 = vld [vmem:[%s1536_s4 + $0x158] sm:$0xf0] }
  0x4f   : > { %v1030_v51 = vld [vmem:[%s1536_s4 + $0x120] sm:$0xf]  ;;  %v1185_v52 = vld [vmem:[%s1536_s4 + $0x12c] sm:$0xf0]  ;;  %v1183_v53 = vld [vmem:[%s1536_s4 + $0x124] sm:$0xf] }
  0x50   : > { %643 = vmatpush.bf16.xpose.msra.mxu0 %v935_v57  ;;  %v1115_v57 = vor.u32 %v1203_v47, %v1112_v48  ;;  %v1181_v2 = vld [vmem:[%s1536_s4 + $0x10c] sm:$0xf0]  ;;  %v1179_v3 = vld [vmem:[%s1536_s4 + $0x104] sm:$0xf]  ;;  %v1016_v4 = vld [vmem:[%s1536_s4 + $0x110] sm:$0xf0] }
  0x51   : > { %656 = vmatpush.bf16.xpose.msra.mxu1 %v939_v58  ;;  %669 = vmatpush.bf16.xpose.msra.mxu2 %v943_v59  ;;  %v1119_v58 = vor.u32 %v1206_v50, %v1118_v49  ;;  %v1624_v59 = vpack.c.b16 %v309_v54, %v309_v54  ;;  %v1059_v50 = vor.u32 %v1188_v45, %v1056_v46  ;;  %v1032_v54 = vld [vmem:[%s1536_s4 + $0x130] sm:$0xf0] }
  0x52   : > { %682 = vmatpush.bf16.xpose.msra.mxu3 %v947_v60  ;;  %v1626_v60 = vpack.c.b16 %v310_v55, %v310_v55  ;;  %v1038_v55 = vld [vmem:[%s1536_s4 + $0x128] sm:$0xf]  ;;  %v1035_v62 = vor.u32 %v1183_v53, %v1032_v54  ;;  %v237_v21 = vld [vmem:[#allocation2] sm:$0xff] }
  0x58   : > { %644 = vmatpush.bf16.xpose.msra.mxu0 %v919_v5  ;;  %v307_v5 = vunpack.c.l.b16 %v239_v1 }
  0x59   : > { %657 = vmatpush.bf16.xpose.msra.mxu1 %v923_v6  ;;  %670 = vmatpush.bf16.xpose.msra.mxu2 %v927_v7  ;;  %v308_v6 = vunpack.c.h.b16 %v239_v1  ;;  %v1200_v7 = vld [vmem:[%s1536_s4 + $0x1ac] sm:$0xf]  ;;  %v1014_v1 = vld [vmem:[%s1536_s4 + $0x100] sm:$0xf] }
  0x5a   : > { %683 = vmatpush.bf16.xpose.msra.mxu3 %v931_v8  ;;  %v1104_v8 = vld [vmem:[%s1536_s4 + $0x1b8] sm:$0xf0]  ;;  %v1639_v10 = vpack.c.b16 %v307_v5, %v307_v5  ;;  %v1022_v5 = vld [vmem:[%s1536_s4 + $0x108] sm:$0xf] }
  0x5b   : > { %v1641_v11 = vpack.c.b16 %v308_v6, %v308_v6  ;;  %v1107_v14 = vor.u32 %v1200_v7, %v1104_v8  ;;  %v1182_v6 = vld [vmem:[%s1536_s4 + $0x114] sm:$0xf0]  ;;  %v1180_v7 = vld [vmem:[%s1536_s4 + $0x10c] sm:$0xf]  ;;  %v1024_v8 = vld [vmem:[%s1536_s4 + $0x118] sm:$0xf0] }
  0x60   : > { %645 = vmatpush.bf16.xpose.msra.mxu0 %v903_v17  ;;  %v1195_v17 = vld [vmem:[%s1536_s4 + $0x184] sm:$0xf] }
  0x61   : > { %658 = vmatpush.bf16.xpose.msra.mxu1 %v907_v18  ;;  %671 = vmatpush.bf16.xpose.msra.mxu2 %v911_v19  ;;  %v1080_v18 = vld [vmem:[%s1536_s4 + $0x190] sm:$0xf0]  ;;  %v1086_v19 = vld [vmem:[%s1536_s4 + $0x188] sm:$0xf] }
  0x62   : > { %684 = vmatpush.bf16.xpose.msra.mxu3 %v915_v20  ;;  %v1198_v20 = vld [vmem:[%s1536_s4 + $0x194] sm:$0xf0]  ;;  %v1083_v24 = vor.u32 %v1195_v17, %v1080_v18 }
  0x63   : > { %v1087_v25 = vor.u32 %v1198_v20, %v1086_v19 }
  0x68   : > { %646 = vmatpush.bf16.xpose.msra.mxu0 %v887_v32  ;;  %v1194_v32 = vld [vmem:[%s1536_s4 + $0x174] sm:$0xf0] }
  0x69   : > { %659 = vmatpush.bf16.xpose.msra.mxu1 %v891_v36  ;;  %672 = vmatpush.bf16.xpose.msra.mxu2 %v895_v37  ;;  %v1067_v36 = vor.u32 %v1191_v29, %v1064_v30  ;;  %v1071_v37 = vor.u32 %v1194_v32, %v1070_v31  ;;  %v238_v31 = vld [vmem:[#allocation2 + $0x8] sm:$0xff] }
  0x6a   : > { %685 = vmatpush.bf16.xpose.msra.mxu3 %v899_v40  ;;  %v1189_v40 = vld [vmem:[%s1536_s4 + $0x14c] sm:$0xf0] }
  0x6b   : > { %v1047_v47 = vor.u32 %v1189_v40, %v1046_v39 }
  0x6f   : > { %647 = vmatmul.bf16.vlgmr.msra.gmra.mxu0 %v1639_v10 }
  0x70   : > { %691 = vmatpush.bf16.xpose.msrb.mxu0 %v1127_v41  ;;  %673 = vmatmul.bf16.vlgmr.msra.gmra.mxu2 %v1624_v59  ;;  %v1187_v41 = vld [vmem:[%s1536_s4 + $0x144] sm:$0xf] }
  0x71   : > { %704 = vmatpush.bf16.xpose.msrb.mxu1 %v1131_v42  ;;  %717 = vmatpush.bf16.xpose.msrb.mxu2 %v1135_v43  ;;  %v1048_v42 = vld [vmem:[%s1536_s4 + $0x150] sm:$0xf0]  ;;  %v1054_v43 = vld [vmem:[%s1536_s4 + $0x148] sm:$0xf] }
  0x72   : > { %730 = vmatpush.bf16.xpose.msrb.mxu3 %v1139_v44  ;;  %660 = vmatmul.bf16.vlgmr.msra.gmra.mxu1 %v1641_v11  ;;  %v1190_v44 = vld [vmem:[%s1536_s4 + $0x154] sm:$0xf0]  ;;  %v1051_v48 = vor.u32 %v1187_v41, %v1048_v42 }
  0x73   : > { %686 = vmatmul.bf16.vlgmr.msra.gmra.mxu3 %v1626_v60  ;;  %v1055_v49 = vor.u32 %v1190_v44, %v1054_v43 }
  0x78   : > { %692 = vmatpush.bf16.xpose.msrb.mxu0 %v1111_v56  ;;  %v1186_v56 = vld [vmem:[%s1536_s4 + $0x134] sm:$0xf0] }
  0x79   : > { %705 = vmatpush.bf16.xpose.msrb.mxu1 %v1115_v57  ;;  %718 = vmatpush.bf16.xpose.msrb.mxu2 %v1119_v58  ;;  %v1184_v57 = vld [vmem:[%s1536_s4 + $0x12c] sm:$0xf]  ;;  %v1040_v58 = vld [vmem:[%s1536_s4 + $0x138] sm:$0xf0]  ;;  %v1039_v63 = vor.u32 %v1186_v56, %v1038_v55 }
  0x7a   : > { %731 = vmatpush.bf16.xpose.msrb.mxu3 %v1123_v61  ;;  %v1031_v61 = vor.u32 %v1185_v52, %v1030_v51  ;;  %v1043_v0 = vor.u32 %v1184_v57, %v1040_v58 }
  0x80   : > { %693 = vmatpush.bf16.xpose.msrb.mxu0 %v1095_v9  ;;  %v1015_v9 = vor.u32 %v1181_v2, %v1014_v1 }
  0x81   : > { %706 = vmatpush.bf16.xpose.msrb.mxu1 %v1099_v12  ;;  %719 = vmatpush.bf16.xpose.msrb.mxu2 %v1103_v13  ;;  %v1019_v12 = vor.u32 %v1179_v3, %v1016_v4  ;;  %v1023_v13 = vor.u32 %v1182_v6, %v1022_v5 }
  0x82   : > { %732 = vmatpush.bf16.xpose.msrb.mxu3 %v1107_v14  ;;  %v1027_v14 = vor.u32 %v1180_v7, %v1024_v8 }
  0x88   : > { %694 = vmatpush.bf16.xpose.msrb.mxu0 %v1079_v23 }
  0x89   : > { %707 = vmatpush.bf16.xpose.msrb.mxu1 %v1083_v24  ;;  %720 = vmatpush.bf16.xpose.msrb.mxu2 %v1087_v25 }
  0x8a   : > { %733 = vmatpush.bf16.xpose.msrb.mxu3 %v1091_v26 }
  0x90   : > { %695 = vmatpush.bf16.xpose.msrb.mxu0 %v1063_v35 }
  0x91   : > { %708 = vmatpush.bf16.xpose.msrb.mxu1 %v1067_v36  ;;  %721 = vmatpush.bf16.xpose.msrb.mxu2 %v1071_v37 }
  0x92   : > { %734 = vmatpush.bf16.xpose.msrb.mxu3 %v1075_v38 }
  0x98   : > { %696 = vmatpush.bf16.xpose.msrb.mxu0 %v1047_v47 }
  0x99   : > { %709 = vmatpush.bf16.xpose.msrb.mxu1 %v1051_v48  ;;  %722 = vmatpush.bf16.xpose.msrb.mxu2 %v1055_v49 }
  0x9a   : > { %735 = vmatpush.bf16.xpose.msrb.mxu3 %v1059_v50 }
  0xa0   : > { %697 = vmatpush.bf16.xpose.msrb.mxu0 %v1031_v61 }
  0xa1   : > { %710 = vmatpush.bf16.xpose.msrb.mxu1 %v1035_v62  ;;  %723 = vmatpush.bf16.xpose.msrb.mxu2 %v1039_v63 }
  0xa2   : > { %736 = vmatpush.bf16.xpose.msrb.mxu3 %v1043_v0 }
  0xa8   : > { %698 = vmatpush.bf16.xpose.msrb.mxu0 %v1015_v9 }
  0xa9   : > { %711 = vmatpush.bf16.xpose.msrb.mxu1 %v1019_v12  ;;  %724 = vmatpush.bf16.xpose.msrb.mxu2 %v1023_v13 }
  0xaa   : > { %737 = vmatpush.bf16.xpose.msrb.mxu3 %v1027_v14 }
  0xaf   : > { %699 = vmatmul.bf16.vlgmr.msrb.gmra.mxu0 %v1639_v10 }
  0xb0   : > { %712 = vmatmul.bf16.vlgmr.msrb.gmra.mxu1 %v1641_v11  ;;  %725 = vmatmul.bf16.vlgmr.msrb.gmra.mxu2 %v1624_v59 }
  0xb1   : > { %738 = vmatmul.bf16.vlgmr.msrb.gmra.mxu3 %v1626_v60 }
  0xec   : > { %v648_v17 = vpop.f32.mrf.mxu0 }
  0xef   : > { %v661_v18 = vpop.f32.mrf.mxu1 }
  0xf0   : > { %v662_v19 = vadd.f32 %v661_v18, %v648_v17 }
  0xf3   : > { %v674_v15 = vpop.f32.mrf.mxu2 }
  0xf4   : > { %v675_v20 = vadd.f32 %v674_v15, %v662_v19  ;;  %v650_v26 = vpop.f32.mrf.mxu0 }
  0xf6   : > { %v687_v16 = vpop.f32.mrf.mxu3 }
  0xf7   : > { %v688_v22 = vadd.f32 %v687_v16, %v675_v20  ;;  %v663_v27 = vpop.f32.mrf.mxu1 }
  0xf9   : > { %v743_v23 = vadd.f32 %v688_v22, %v237_v21 }
  0xfb   : > { %v676_v24 = vpop.f32.mrf.mxu2  ;;  %745 = vst [vmem:[#allocation2] sm:$0xff] %v743_v23 }
  0xfe   : > { %v689_v25 = vpop.f32.mrf.mxu3 }
 0x12c   : > { %v700_v10 = vpop.f32.mrf.mxu0 }
 0x12d   : > { %v713_v11 = vpop.f32.mrf.mxu1 }
 0x12e   : > { %v714_v28 = vadd.f32 %v713_v11, %v700_v10 }
 0x133   : > { %v726_v59 = vpop.f32.mrf.mxu2 }
 0x134   : > { %v727_v29 = vadd.f32 %v726_v59, %v714_v28  ;;  %v739_v60 = vpop.f32.mrf.mxu3  ;;  %v702_v30 = vpop.f32.mrf.mxu0 }
 0x135   : > { %v715_v32 = vpop.f32.mrf.mxu1 }
 0x136   : > { %v740_v33 = vadd.f32 %v739_v60, %v727_v29 }
 0x138   : > { %v744_v34 = vadd.f32 %v740_v33, %v238_v31  ;;  %750 = sbr.rel (%p1140_p0) target bundleno = 329 (0x149), region = 44 }
 0x13a   : > { %746 = vst [vmem:[#allocation2 + $0x8] sm:$0xff] %v744_v34 }
 0x13b   : > { %v728_v35 = vpop.f32.mrf.mxu2 }
 0x13c   : > { %v741_v36 = vpop.f32.mrf.mxu3 }
 0x13d   : > { %v751_v37 = vld [vmem:[#allocation2] sm:$0xff] }
 0x13e   : > { %v753_v39 = vmul.f32 0.044194173, %v751_v37 }
 0x140   : > { %v755_v41 = vmul.f32 0.2, %v753_v39 }
 0x141   : > { %v752_v38 = vld [vmem:[#allocation2 + $0x8] sm:$0xff] }
 0x142   : > { %v754_v40 = vmul.f32 0.044194173, %v752_v38  ;;  %v757_v43 = vmax.f32 %v753_v39, %v755_v41 }
 0x144   : > { %v756_v42 = vmul.f32 0.2, %v754_v40  ;;  %759 = vst [vmem:[#allocation8] sm:$0xff] %v757_v43 }
 0x146   : > { %v758_v44 = vmax.f32 %v754_v40, %v756_v42 }
 0x148   : > { %760 = vst [vmem:[#allocation8 + $0x8] sm:$0xff] %v758_v44 }
 0x149 PF: > { %p1227_p1 = scmp.eq.s32.totalorder %s871_s15, 1  ;;  %s774_s5 = sshll.u32 %s1715_s2, 4  ;;  %s775_s5 = int_to_ptr.hbm [resolvable:$true] %s774_s5 }
 0x14a   : > { %s1434_s12 = smov [#allocation8]  }
 0x14b   : > { %s772_s6 = sshll.u32 %s1434_s12, 4  ;;  %s773_s6 = int_to_ptr.vmem [resolvable:$true] %s772_s6 }
 0x14c   : > { %1216 = dma.vmem_to_hbm [thread:$0]  (%p1227_p1), %s773_s6, 256, %s775_s5, [#allocation5]  }
 0x14d   : > { %1403 = dma.done.wait (%p1227_p1), [#allocation5], 256  }
 0x14e   : > { %1405 = vsyncadd (%p1227_p1), [#allocation5], 4294967040 }
 0x14f PF: > { %s19_s14 = sadd.s32 1, %s1428_s14   ;;  %s1719_s9 = smov %s1412_s10 }
 0x150   : > { %p16_p2 = scmp.ge.s32.totalorder %s19_s14, 4   ;;  %s1720_s10 = smov %s1416_s11 }
 0x151   : > { %s1721_s11 = smov %s1501_s21  ;;  %s1722_s12 = smov %s1424_s13 }
 0x152   : > { %s1723_s13 = smov %s1725_s16  ;;  %18 = sbr.rel (!%p16_p2) target bundleno = 7 (0x7), region = 87 }
 0x157   :  { %788 = vsyncpa [#allocation4], 1 }
 0x158   :  { %790 = vsyncpa [#allocation4 + $0x1], 1 }
 0x159   :  { %791 = vsyncpa [#allocation7], 1 }
 0x15a   :  { %793 = vsyncpa [#allocation7 + $0x1], 1 }
 0x15b   :  { %794 = vsyncpa [#allocation5], 1 }
 0x15c   :  { %796 = vsyncpa [#allocation5 + $0x1], 1 }

</bundles_post_ra>
